<compile_context>
chip_gen: v5e
topology: v5e:2x2
jax: 0.10.0
libtpu: 0.0.40
codegen_flags: <defaults>
</compile_context>

<pallas_src>
import jax
import jax.numpy as jnp
from jax import lax
from jax.experimental import pallas as pl
from jax.experimental.pallas import tpu as pltpu

_LANE = 128
_SUBLANE = 8
_NEG_BIG = -1e30   # fill for L1-padding rows (distinct from the user-mask -100)


def _round_up(x, m):
    return (x + m - 1) // m * m


def _largest_divisor(n, cap, multiple_of=1):
    cap = min(n, max(cap, 1))
    for d in range(cap, 0, -1):
        if n % d == 0 and d % multiple_of == 0:
            return d
    return None


def _vmem_budget():
    """Generation-aware VMEM sizing (v5e/v6e: 128 MiB, v7x: 64 MiB)."""
    mib = 1024 * 1024
    cap = 64 * mib
    try:
        info = pltpu.get_tpu_info()
        cap = int(getattr(info, "vmem_capacity_bytes", cap) or cap)
    except Exception:
        pass
    # leave headroom for compiler scratch / semaphores / pipeline bookkeeping
    vmem_limit = max(32 * mib, min(cap - 12 * mib, 116 * mib))
    tile_budget = max(16 * mib, vmem_limit - 12 * mib)
    return tile_budget, vmem_limit


def _choose_tiles(B, L1p, L2p, Dp, Dop, comp_isz, out_isz, budget):
    def step_bytes(bt, tl2):
        b = 2 * bt * L1p * Dp * comp_isz            # input1 block (double-buffered)
        b += 2 * bt * tl2 * Dop * comp_isz          # input2 block
        b += 2 * Dop * Dp * comp_isz                # weight block
        b += 2 * bt * L1p * 4                       # mask block (f32)
        b += 2 * bt * tl2 * Dp * out_isz            # output block
        b += bt * L1p * Dop * comp_isz              # out1 scratch (persistent)
        b += bt * tl2 * L1p * 4 * 3                 # score / exp temporaries
        b += bt * tl2 * Dp * 4                      # attn f32 accumulator
        b += bt * L1p * Dop * 4                     # out1 f32 intermediate (j==0)
        return b

    tl2 = _largest_divisor(L2p, 512, multiple_of=_SUBLANE) or L2p
    bt = _largest_divisor(B, 16) or 1
    while step_bytes(bt, tl2) > budget:
        if tl2 > _LANE:
            nxt = _largest_divisor(L2p, tl2 - 1, multiple_of=_SUBLANE)
            if nxt is not None:
                tl2 = nxt
                continue
        if bt > 1:
            bt = _largest_divisor(B, bt - 1) or 1
            continue
        if tl2 > _SUBLANE:
            nxt = _largest_divisor(L2p, tl2 - 1, multiple_of=_SUBLANE)
            if nxt is not None:
                tl2 = nxt
                continue
        break   # smallest legal tile; bounded by vmem_limit (see TODO below)
    return bt, tl2


def _make_kernel(has_mask, l1_real, l1_padded, matmul_dtype):
    def kernel(*refs):
        if has_mask:
            x1_ref, x2_ref, w_ref, m_ref, o_ref, out1_ref = refs
        else:
            x1_ref, x2_ref, w_ref, o_ref, out1_ref = refs
            m_ref = None

        j = pl.program_id(1)

        # matmul 1: out1 = input1 @ W.T, computed once per batch tile and
        # cached in VMEM scratch; every L2 tile of this batch tile reuses it.
        @pl.when(j == 0)
        def _():
            x1 = x1_ref[...]                         # (Bt, L1p, Dp)
            w = w_ref[...]                           # (Dop, Dp)
            bt, l1, dp = x1.shape
            out1 = lax.dot_general(
                x1.reshape(bt * l1, dp), w,
                dimension_numbers=(((1,), (1,)), ((), ())),
                preferred_element_type=jnp.float32)
            out1_ref[...] = out1.reshape(bt, l1, -1).astype(out1_ref.dtype)

        x2 = x2_ref[...]                             # (Bt, tL2, Dop)
        out1 = out1_ref[...]                         # (Bt, L1p, Dop)

        # matmul 2: score tile produced already transposed:
        #   st[b, k, l] = sum_o input2[b, k, o] * out1[b, l, o]
        st = jnp.einsum('bko,blo->bkl', x2, out1,
                        preferred_element_type=jnp.float32)

        if has_mask:
            m = m_ref[...]                           # (Bt, 1, L1p): 1=keep 0=mask
            st = jnp.where(m > 0.0, st, jnp.float32(-100.0))
        if l1_padded:
            # rows added by L1 padding must vanish after the softmax
            row = lax.broadcasted_iota(jnp.int32, st.shape, 2)
            st = jnp.where(row < l1_real, st, jnp.float32(_NEG_BIG))

        # softmax over L1 (last axis of the transposed score tile), in f32
        s_max = jnp.max(st, axis=-1, keepdims=True)
        p = jnp.exp(st - s_max)
        denom = jnp.sum(p, axis=-1, keepdims=True)
        if matmul_dtype is None:
            p = p / denom                                     # exact f32 path
        else:
            p = p * pl.reciprocal(denom, approx=True)         # EUP slot
            p = p.astype(matmul_dtype)

        # matmul 3: satt = softmax(out2).T @ input1  -> (Bt, tL2, Dp)
        attn = jnp.einsum('bkl,bld->bkd', p, x1_ref[...],
                          preferred_element_type=jnp.float32)
        o_ref[...] = attn.astype(o_ref.dtype)

    return kernel


def word_alignment(input1, input2, weight, input_mask=None, *,
                   matmul_dtype=jnp.bfloat16):
    """input1: [B, L1, Din], input2: [B, L2, Dout], weight: [Dout, Din],
    input_mask: optional bool [B, L1].  Returns [B, L2, Din].

    matmul_dtype=jnp.bfloat16 (default) runs the MXU in bf16 with f32
    accumulation; pass matmul_dtype=None for exact f32 matmuls + exact softmax.
    """
    B, L1, Din = input1.shape
    _, L2, Dout = input2.shape
    assert weight.shape == (Dout, Din)
    out_dtype = input1.dtype

    # The PyTorch module only applies the mask when batch sizes match.
    has_mask = input_mask is not None and input_mask.shape[0] == B
    comp_dtype = matmul_dtype if matmul_dtype is not None else jnp.float32

    # Lane-dense feature dims (zero columns are provably inert), sublane-dense
    # sequence dims.  L1 padding rows are masked to -1e30 inside the kernel;
    # L2 padding rows are sliced off the output.
    Dp = _round_up(Din, _LANE)
    Dop = _round_up(Dout, _LANE)
    L1p = _round_up(L1, _SUBLANE)
    L2p = _round_up(L2, _SUBLANE)

    x1 = jnp.pad(input1, ((0, 0), (0, L1p - L1), (0, Dp - Din)))
    x2 = jnp.pad(input2, ((0, 0), (0, L2p - L2), (0, Dop - Dout)))
    w = jnp.pad(weight, ((0, Dop - Dout), (0, Dp - Din)))

    # Cast the big operands once in the wrapper (halves HBM DMA bytes and VMEM
    # block footprints on the bf16 path; no per-step in-kernel casts remain).
    x1 = x1.astype(comp_dtype)
    x2 = x2.astype(comp_dtype)
    w = w.astype(comp_dtype)

    comp_isz = jnp.dtype(comp_dtype).itemsize
    out_isz = jnp.dtype(out_dtype).itemsize
    tile_budget, vmem_limit = _vmem_budget()
    Bt, tL2 = _choose_tiles(B, L1p, L2p, Dp, Dop, comp_isz, out_isz, tile_budget)
    grid = (B // Bt, L2p // tL2)

    in_specs = [
        pl.BlockSpec((Bt, L1p, Dp), lambda b, j: (b, 0, 0)),
        pl.BlockSpec((Bt, tL2, Dop), lambda b, j: (b, j, 0)),
        pl.BlockSpec((Dop, Dp), lambda b, j: (0, 0)),
    ]
    args = [x1, x2, w]
    if has_mask:
        # Mask laid out as (B, 1, L1p): L1 sits on the lane axis, matching the
        # transposed (tL2, L1p) score tile.  Padding positions are "keep"
        # (1.0); the in-kernel iota select overrides them with -1e30.
        mask_f = jnp.pad(input_mask.astype(jnp.float32),
                         ((0, 0), (0, L1p - L1)), constant_values=1.0)[:, None, :]
        in_specs.append(pl.BlockSpec((Bt, 1, L1p), lambda b, j: (b, 0, 0)))
        args.append(mask_f)

    # TODO(synk): very long L1 keeps the full (Bt, tL2, L1p) f32 score tile
    # resident; an online-softmax over an inner L1 loop would bound that.
    out_padded = pl.pallas_call(
        _make_kernel(has_mask, L1, L1p != L1, matmul_dtype),
        out_shape=jax.ShapeDtypeStruct((B, L2p, Dp), out_dtype),
        grid_spec=pltpu.PrefetchScalarGridSpec(
            num_scalar_prefetch=0,
            grid=grid,
            in_specs=in_specs,
            out_specs=pl.BlockSpec((Bt, tL2, Dp), lambda b, j: (b, j, 0)),
            scratch_shapes=[pltpu.VMEM((Bt, L1p, Dop), comp_dtype)],
        ),
        compiler_params=pltpu.CompilerParams(
            # axis 0 (batch tiles) shards across TensorCores; axis 1 carries
            # the cached out1 scratch, so it must stay sequential per core.
            dimension_semantics=("parallel", "arbitrary"),
            vmem_limit_bytes=vmem_limit,
        ),
    )(*args)

    if L2p != L2 or Dp != Din:
        return out_padded[:, :L2, :Din]
    return out_padded


def _reference(input1, input2, weight, input_mask=None, matmul_dtype=None):
    x1, x2, w = input1, input2, weight
    if matmul_dtype is not None:
        x1, x2, w = (x1.astype(matmul_dtype), x2.astype(matmul_dtype),
                     w.astype(matmul_dtype))
    out1 = jnp.einsum('bld,od->blo', x1, w, preferred_element_type=jnp.float32)
    if matmul_dtype is not None:
        out1 = out1.astype(matmul_dtype)
    out2 = jnp.einsum('blo,bko->blk', out1, x2,
                      preferred_element_type=jnp.float32)
    if input_mask is not None and input_mask.shape[0] == input1.shape[0]:
        out2 = jnp.where(input_mask[:, :, None], out2, -100.0)
    p = jax.nn.softmax(out2, axis=1)
    if matmul_dtype is not None:
        p = p.astype(matmul_dtype)
    out = jnp.einsum('blk,bld->bkd', p, x1, preferred_element_type=jnp.float32)
    return out.astype(input1.dtype)


if __name__ == "__main__":
    B, L1, L2 = 2, 8, 8
    IN_FEATURES, OUT_FEATURES = 32, 32

    key = jax.random.PRNGKey(0)
    k1, k2, kw, km = jax.random.split(key, 4)

    input1 = jax.random.normal(k1, (B, L1, IN_FEATURES), jnp.float32)
    input2 = jax.random.normal(k2, (B, L2, OUT_FEATURES), jnp.float32)

    # Xavier-uniform init for weight [out_features, in_features]
    bound = (6.0 / (IN_FEATURES + OUT_FEATURES)) ** 0.5
    weight = jax.random.uniform(
        kw, (OUT_FEATURES, IN_FEATURES), jnp.float32, -bound, bound)

    # optional mask over input1 positions
    input_mask = jax.random.uniform(km, (B, L1)) > 0.2

    # bf16-MXU path (default); compare against a matching bf16 reference.
    out_bf16 = jax.block_until_ready(
        word_alignment(input1, input2, weight, input_mask))
    ref_bf16 = _reference(input1, input2, weight, input_mask,
                          matmul_dtype=jnp.bfloat16)
    assert out_bf16.shape == (B, L2, IN_FEATURES)
    assert jnp.allclose(out_bf16, ref_bf16, atol=3e-2, rtol=3e-2)

    # exact-f32 path (exact softmax normalizer, f32 matmuls).
    out_f32 = jax.block_until_ready(
        word_alignment(input1, input2, weight, input_mask, matmul_dtype=None))
    ref_f32 = _reference(input1, input2, weight, input_mask)
    assert jnp.allclose(out_f32, ref_f32, atol=1e-2, rtol=1e-2)

    # no-mask specialization (mask operand and the select are compiled out).
    out_nm = jax.block_until_ready(
        word_alignment(input1, input2, weight, matmul_dtype=None))
    assert jnp.allclose(out_nm, _reference(input1, input2, weight),
                        atol=1e-2, rtol=1e-2)

    # ragged shapes: exercises Din/Dout lane padding, L1/L2 sublane padding and
    # the -1e30 padding-row mask (distinct from the user-mask -100).
    Br, L1r, L2r, Dinr, Doutr = 2, 5, 6, 20, 24
    kr = jax.random.split(jax.random.PRNGKey(0), 4)
    a1 = jax.random.normal(kr[0], (Br, L1r, Dinr), jnp.float32)
    a2 = jax.random.normal(kr[1], (Br, L2r, Doutr), jnp.float32)
    wr = jax.random.normal(kr[2], (Doutr, Dinr), jnp.float32) * 0.2
    mr = jax.random.uniform(kr[3], (Br, L1r)) > 0.3
    out_r = jax.block_until_ready(word_alignment(a1, a2, wr, mr, matmul_dtype=None))
    ref_r = _reference(a1, a2, wr, mr)
    assert out_r.shape == (Br, L2r, Dinr)
    assert jnp.allclose(out_r, ref_r, atol=1e-2, rtol=1e-2)

    print("KERNEL_OK")
</pallas_src>

<mosaic_0001>
module attributes {stable_mosaic.version = 11 : i64} {
  func.func @kernel(%arg0: i32, %arg1: i32, %arg2: memref<2x8x128xbf16, #tpu.memory_space<vmem>>, %arg3: memref<2x8x128xbf16, #tpu.memory_space<vmem>>, %arg4: memref<128x128xbf16, #tpu.memory_space<vmem>>, %arg5: memref<2x1x8xf32, #tpu.memory_space<vmem>>, %arg6: memref<2x8x128xf32, #tpu.memory_space<vmem>>, %arg7: memref<2x8x128xbf16, #tpu.memory_space<vmem>>) attributes {dimension_semantics = [#tpu.dimension_semantics<parallel>, #tpu.dimension_semantics<arbitrary>], iteration_bounds = array<i64: 1, 1>, scalar_prefetch = 0 : i64, scratch_operands = 1 : i64, tpu.core_type = #tpu.core_type<tc>, window_params = [{transform_indices = @transform_0, window_bounds = array<i64: 2, 8, 128>}, {transform_indices = @transform_1, window_bounds = array<i64: 2, 8, 128>}, {pipeline_mode = #tpu.pipeline_mode<synchronous>, transform_indices = @transform_2, window_bounds = array<i64: 128, 128>}, {transform_indices = @transform_3, window_bounds = array<i64: 2, 1, 8>}, {transform_indices = @transform_4, window_bounds = array<i64: 2, 8, 128>}]} {
    %c0_i32 = arith.constant 0 : i32
    %0 = arith.cmpi eq, %arg1, %c0_i32 : i32
    %1 = arith.extui %0 : i1 to i32
    %c0_i32_0 = arith.constant 0 : i32
    %2 = arith.cmpi ne, %1, %c0_i32_0 : i32
    scf.if %2 {
      %c0_20 = arith.constant 0 : index
      %c0_21 = arith.constant 0 : index
      %c0_22 = arith.constant 0 : index
      %27 = vector.load %arg2[%c0_20, %c0_21, %c0_22] : memref<2x8x128xbf16, #tpu.memory_space<vmem>>, vector<2x8x128xbf16>
      %c0_23 = arith.constant 0 : index
      %c0_24 = arith.constant 0 : index
      %28 = vector.load %arg4[%c0_23, %c0_24] : memref<128x128xbf16, #tpu.memory_space<vmem>>, vector<128x128xbf16>
      %29 = vector.shape_cast %27 : vector<2x8x128xbf16> to vector<16x128xbf16>
      %cst_25 = arith.constant dense<0.000000e+00> : vector<16x128xf32>
      %30 = tpu.matmul %29, %28, %cst_25 {dimension_numbers = #tpu.dot_dimension_numbers<[1], [1], [0], [0], [0, 0, 1, 0], [], []>} : vector<16x128xbf16>, vector<128x128xbf16>, vector<16x128xf32> -> vector<16x128xf32>
      %31 = vector.shape_cast %30 : vector<16x128xf32> to vector<2x8x128xf32>
      %32 = arith.truncf %31 : vector<2x8x128xf32> to vector<2x8x128xbf16>
      %c0_26 = arith.constant 0 : index
      %c0_27 = arith.constant 0 : index
      %c0_28 = arith.constant 0 : index
      %33 = vector.load %arg7[%c0_26, %c0_27, %c0_28] : memref<2x8x128xbf16, #tpu.memory_space<vmem>>, vector<2x8x128xbf16>
      tpu.vector_store %arg7[%c0_26, %c0_27, %c0_28], %32 {strides = array<i32>} : memref<2x8x128xbf16, #tpu.memory_space<vmem>>, vector<2x8x128xbf16>,
    } else {
    }
    %c0 = arith.constant 0 : index
    %c0_1 = arith.constant 0 : index
    %c0_2 = arith.constant 0 : index
    %3 = vector.load %arg3[%c0, %c0_1, %c0_2] : memref<2x8x128xbf16, #tpu.memory_space<vmem>>, vector<2x8x128xbf16>
    %c0_3 = arith.constant 0 : index
    %c0_4 = arith.constant 0 : index
    %c0_5 = arith.constant 0 : index
    %4 = vector.load %arg7[%c0_3, %c0_4, %c0_5] : memref<2x8x128xbf16, #tpu.memory_space<vmem>>, vector<2x8x128xbf16>
    "tpu.trace_start"() <{level = 10 : i32, message = "bko,blo->bkl"}> : () -> ()
    %cst = arith.constant dense<0.000000e+00> : vector<2x8x8xf32>
    %5 = tpu.matmul %3, %4, %cst {dimension_numbers = #tpu.dot_dimension_numbers<[2], [2], [1], [1], [0, 0, 0, 1, 1, 1], [0], [0]>} : vector<2x8x128xbf16>, vector<2x8x128xbf16>, vector<2x8x8xf32> -> vector<2x8x8xf32>
    "tpu.trace_stop"() : () -> ()
    %c0_6 = arith.constant 0 : index
    %c0_7 = arith.constant 0 : index
    %c0_8 = arith.constant 0 : index
    %6 = vector.load %arg5[%c0_6, %c0_7, %c0_8] : memref<2x1x8xf32, #tpu.memory_space<vmem>>, vector<2x1x8xf32>
    %cst_9 = arith.constant 0.000000e+00 : f32
    %7 = vector.broadcast %cst_9 : f32 to vector<2x1x8xf32>
    %8 = arith.cmpf ogt, %6, %7 : vector<2x1x8xf32>
    %cst_10 = arith.constant -1.000000e+02 : f32
    %9 = vector.shape_cast %8 : vector<2x1x8xi1> to vector<2x1x8xi1>
    %10 = vector.broadcast %9 : vector<2x1x8xi1> to vector<2x8x8xi1>
    %11 = vector.broadcast %cst_10 : f32 to vector<2x8x8xf32>
    %12 = arith.select %10, %5, %11 : vector<2x8x8xi1>, vector<2x8x8xf32>
    %cst_11 = arith.constant dense<0xFF800000> : vector<2x8xf32>
    %13 = vector.multi_reduction <maximumf>, %12, %cst_11 [2] : vector<2x8x8xf32> to vector<2x8xf32>
    %14 = vector.shape_cast %13 : vector<2x8xf32> to vector<2x8x1xf32>
    %15 = vector.broadcast %14 : vector<2x8x1xf32> to vector<2x8x8xf32>
    %16 = arith.subf %12, %15 : vector<2x8x8xf32>
    %17 = math.exp %16 : vector<2x8x8xf32>
    %cst_12 = arith.constant dense<0.000000e+00> : vector<2x8xf32>
    %18 = vector.multi_reduction <add>, %17, %cst_12 [2] : vector<2x8x8xf32> to vector<2x8xf32>
    %19 = vector.shape_cast %18 : vector<2x8xf32> to vector<2x8x1xf32>
    %20 = tpu.reciprocal %19 {approx = true} : vector<2x8x1xf32> -> vector<2x8x1xf32>
    %21 = vector.broadcast %20 : vector<2x8x1xf32> to vector<2x8x8xf32>
    %22 = arith.mulf %17, %21 : vector<2x8x8xf32>
    %23 = arith.truncf %22 : vector<2x8x8xf32> to vector<2x8x8xbf16>
    %c0_13 = arith.constant 0 : index
    %c0_14 = arith.constant 0 : index
    %c0_15 = arith.constant 0 : index
    %24 = vector.load %arg2[%c0_13, %c0_14, %c0_15] : memref<2x8x128xbf16, #tpu.memory_space<vmem>>, vector<2x8x128xbf16>
    "tpu.trace_start"() <{level = 10 : i32, message = "bkl,bld->bkd"}> : () -> ()
    %cst_16 = arith.constant dense<0.000000e+00> : vector<2x8x128xf32>
    %25 = tpu.matmul %23, %24, %cst_16 {dimension_numbers = #tpu.dot_dimension_numbers<[2], [1], [1], [2], [0, 0, 0, 1, 1, 2], [0], [0]>} : vector<2x8x8xbf16>, vector<2x8x128xbf16>, vector<2x8x128xf32> -> vector<2x8x128xf32>
    "tpu.trace_stop"() : () -> ()
    %c0_17 = arith.constant 0 : index
    %c0_18 = arith.constant 0 : index
    %c0_19 = arith.constant 0 : index
    %26 = vector.load %arg6[%c0_17, %c0_18, %c0_19] : memref<2x8x128xf32, #tpu.memory_space<vmem>>, vector<2x8x128xf32>
    tpu.vector_store %arg6[%c0_17, %c0_18, %c0_19], %25 {strides = array<i32>} : memref<2x8x128xf32, #tpu.memory_space<vmem>>, vector<2x8x128xf32>,
    return
  }
  func.func @transform_0(%arg0: i32, %arg1: i32) -> (i32, i32, i32) {
    %c0_i32 = arith.constant 0 : i32
    %c0_i32_0 = arith.constant 0 : i32
    %c0_i32_1 = arith.constant 0 : i32
    return %arg0, %c0_i32, %c0_i32_0 : i32, i32, i32
  }
  func.func @transform_1(%arg0: i32, %arg1: i32) -> (i32, i32, i32) {
    %c0_i32 = arith.constant 0 : i32
    %c0_i32_0 = arith.constant 0 : i32
    return %arg0, %arg1, %c0_i32 : i32, i32, i32
  }
  func.func @transform_2(%arg0: i32, %arg1: i32) -> (i32, i32) {
    %c0_i32 = arith.constant 0 : i32
    %c0_i32_0 = arith.constant 0 : i32
    %c0_i32_1 = arith.constant 0 : i32
    return %c0_i32, %c0_i32_0 : i32, i32
  }
  func.func @transform_3(%arg0: i32, %arg1: i32) -> (i32, i32, i32) {
    %c0_i32 = arith.constant 0 : i32
    %c0_i32_0 = arith.constant 0 : i32
    %c0_i32_1 = arith.constant 0 : i32
    return %arg0, %c0_i32, %c0_i32_0 : i32, i32, i32
  }
  func.func @transform_4(%arg0: i32, %arg1: i32) -> (i32, i32, i32) {
    %c0_i32 = arith.constant 0 : i32
    %c0_i32_0 = arith.constant 0 : i32
    return %arg0, %arg1, %c0_i32 : i32, i32, i32
  }
}

</mosaic_0001>

<bundles_post_ra>
// kernel: tpu_custom_call.1
= control target key start
LH: loop header
LB: loop body
LE: loop exit
PB: predicated region body
PF: predicated region fallthrough
CT: control target
= control target key end

     0   :  { %9 = vsyncpa [#allocation4], 0  ;;  %s519_s0 = inlined_call_operand.hbm [shape: bf16[2,8,128], index: 0, kind: input, shape index: {}]   ;;  %s520_s1 = inlined_call_operand.hbm [shape: bf16[2,8,128], index: 1, kind: input, shape index: {}]   ;;  %s521_s2 = inlined_call_operand.hbm [shape: bf16[128,128], index: 2, kind: input, shape index: {}]   ;;  %s522_s3 = inlined_call_operand.vmem [shape: f32[2,1,8], index: 3, kind: input, shape index: {}]   ;;  %s523_s4 = inlined_call_operand.hbm [shape: f32[2,8,128], index: 4, kind: output, shape index: {}]  }
   0x1   :  { %10 = vsyncpa [#allocation7], 0 }
   0x2   :  { %11 = vsyncpa [#allocation5], 0  ;;  %s29_s17 = sshll.u32 %s520_s1, 4  ;;  %s461_s18 = smov [#allocation6]   ;;  %s30_s17 = int_to_ptr.hbm [resolvable:$true] %s29_s17 }
   0x3   :  { %s31_s19 = sshll.u32 %s461_s18, 4  ;;  %s16_s22 = sshll.u32 %s519_s0, 4  ;;  %s32_s19 = int_to_ptr.vmem [resolvable:$true] %s31_s19  ;;  %s17_s22 = int_to_ptr.hbm [resolvable:$true] %s16_s22 }
   0x4   :  { %s462_s23 = smov 64   ;;  %s463_s24 = smov 4  }
   0x5   :  { %37 = dma.hbm_to_vmem [thread:$0]  %s30_s17, 128, %s32_s19, [#allocation7], %s462_s23, %s462_s23, %s463_s24  }
   0x6   :  { %s464_s25 = smov [#allocation3]   ;;  %s42_s29 = sshll.u32 %s521_s2, 4  ;;  %s43_s29 = int_to_ptr.hbm [resolvable:$true] %s42_s29 }
   0x7   :  { %s18_s26 = sshll.u32 %s464_s25, 4  ;;  %s465_s1 = smov [#allocation8]   ;;  %s19_s26 = int_to_ptr.vmem [resolvable:$true] %s18_s26 }
   0x8   :  { %24 = dma.hbm_to_vmem [thread:$0]  %s17_s22, 128, %s19_s26, [#allocation4], %s462_s23, %s462_s23, %s463_s24  }
   0x9   :  { %s44_s30 = sshll.u32 %s465_s1, 4  ;;  %s45_s30 = int_to_ptr.vmem [resolvable:$true] %s44_s30 }
   0xa   :  { %50 = dma.hbm_to_vmem [thread:$0]  %s43_s29, 1024, %s45_s30, [#allocation7], %s462_s23, %s462_s23, %s463_s24  }
   0xb   :  { %455 = dma.done.wait [#allocation4], 128  }
   0xc   :  { %456 = vsyncadd [#allocation4], 4294967168 }
   0xd   :  { %457 = dma.done.wait [#allocation7], 1152  }
   0xe   :  { %458 = vsyncadd [#allocation7], 4294966144  ;;  %v336_v0 = vld [vmem:[#allocation8 + $0x38] sm:$0xff]  ;;  %v335_v1 = vld [vmem:[#allocation8 + $0x30] sm:$0xff]  ;;  %v466_v17 = vmov 0   ;;  %vm202_vm3 = vcmask 64512  }
   0xf   :  { %142 = vmatpush.bf16.xpose.msra.mxu0 %v336_v0  ;;  %v334_v2 = vld [vmem:[#allocation8 + $0x28] sm:$0xff]  ;;  %v333_v3 = vld [vmem:[#allocation8 + $0x20] sm:$0xff]  ;;  %v332_v4 = vld [vmem:[#allocation8 + $0x18] sm:$0xff]  ;;  %vm232_vm5 = vcmask 1043456   ;;  %s276_s10 = sshll.u32 %s523_s4, 4  ;;  %s468_s11 = smov 128   ;;  %s277_s10 = int_to_ptr.hbm [resolvable:$true] %s276_s10 }
  0x10   :  { %v331_v5 = vld [vmem:[#allocation8 + $0x10] sm:$0xff]  ;;  %v330_v6 = vld [vmem:[#allocation8 + $0x8] sm:$0xff]  ;;  %v329_v7 = vld [vmem:[#allocation8] sm:$0xff]  ;;  %s469_s12 = smov 8  }
  0x11   :  { %v328_v8 = vld [vmem:[#allocation3] sm:$0xff]  ;;  %v160_v14 = vld [vmem:[#allocation6] sm:$0xf]  ;;  %v161_v15 = vld [vmem:[#allocation6 + $0x4] sm:$0xf] }
  0x12   :  { %v190_v16 = vld [vmem:[%s522_s3] sm:$0x1]  ;;  %v191_v19 = vld [vmem:[%s522_s3 + $0x1] sm:$0x1]  ;;  %v227_v41 = vld [vmem:[#allocation3] sm:$0xf] }
  0x13   :  { %vm192_vm0 = vcmp.gt.f32.partialorder %v190_v16, 0.0  ;;  %vm193_vm1 = vcmp.gt.f32.partialorder %v191_v19, 0.0  ;;  %v234_v42 = vsel %vm232_vm5, %v227_v41, 0  ;;  %v228_v43 = vld [vmem:[#allocation3 + $0x4] sm:$0xf]  ;;  %s467_s3 = smov [#allocation9]  }
  0x14   :  { %v194_v18 = vsel %vm192_vm0, 1, %v466_v17  ;;  %v195_v21 = vsel %vm193_vm1, 1, %v466_v17  ;;  %243 = vmatpush.bf16.msra.mxu3 %v234_v42  ;;  %v253_v44 = vsel %vm232_vm5, %v228_v43, 0  ;;  %s274_s7 = sshll.u32 %s467_s3, 4  ;;  %s275_s7 = int_to_ptr.vmem [resolvable:$true] %s274_s7 }
  0x15   :  { %v196_v20 = vperm.slane %v194_v18, 0  ;;  %v197_v23 = vperm.slane %v195_v21, 0 }
  0x17   :  { %143 = vmatpush.bf16.xpose.msra.mxu0 %v335_v1  ;;  %vm198_vm2 = vcmp.eq.s32.totalorder %v196_v20, 1  ;;  %vm199_vm4 = vcmp.eq.s32.totalorder %v197_v23, 1 }
  0x18   :  { %262 = vmatpush.bf16.msrb.mxu3 %v253_v44 }
  0x1f   :  { %144 = vmatpush.bf16.xpose.msra.mxu0 %v334_v2 }
  0x27   :  { %145 = vmatpush.bf16.xpose.msra.mxu0 %v333_v3 }
  0x2f   :  { %146 = vmatpush.bf16.xpose.msra.mxu0 %v332_v4 }
  0x37   :  { %147 = vmatpush.bf16.xpose.msra.mxu0 %v331_v5 }
  0x3f   :  { %148 = vmatpush.bf16.xpose.msra.mxu0 %v330_v6 }
  0x47   :  { %149 = vmatpush.bf16.xpose.msra.mxu0 %v329_v7 }
  0x4e   :  { %150 = vmatmul.bf16.vlgmr.msra.gmra.mxu0 %v328_v8 }
  0xcb   :  { %v151_v9 = vpop.f32.mrf.mxu0 }
  0xd3   :  { %v153_v10 = vpop.f32.mrf.mxu0 }
  0xd4   :  { %v340_v11 = vpack.c.bf16 %v153_v10, %v151_v9 }
  0xd6   :  { %341 = vst [vmem:[#allocation2] sm:$0xff] %v340_v11  }
  0xdd   :  { %v162_v12 = vld [vmem:[#allocation2] sm:$0xf]  ;;  %v163_v13 = vld [vmem:[#allocation2 + $0x4] sm:$0xf] }
  0xde   :  { %171 = vmatpush.bf16.xpose.msra.mxu1 %v162_v12  ;;  %184 = vmatpush.bf16.xpose.msra.mxu2 %v163_v13 }
  0xe5   :  { %172 = vmatmul.bf16.vlgmr.msra.gmra.mxu1 %v160_v14  ;;  %185 = vmatmul.bf16.vlgmr.msra.gmra.mxu2 %v161_v15 }
 0x162   :  { %v173_v22 = vpop.f32.mrf.mxu1 }
 0x163   :  { %v200_v24 = vsel %vm198_vm2, %v173_v22, -100.0 }
 0x164   :  { %v203_v25 = vsel %vm202_vm3, %v200_v24, -inf }
 0x165   :  { %204 = vmax.xlane.f32.xlu0 %v203_v25 }
 0x168   :  { %v186_v26 = vpop.f32.mrf.mxu2 }
 0x169   :  { %v201_v27 = vsel %vm199_vm4, %v186_v26, -100.0 }
 0x16a   :  { %v175_v28 = vpop.f32.mrf.mxu1  ;;  %v206_v29 = vsel %vm202_vm3, %v201_v27, -inf }
 0x16d   :  { %207 = vmax.xlane.f32.xlu0 %v206_v29 }
 0x170   :  { %v188_v30 = vpop.f32.mrf.mxu2 }
 0x1d8   :  { %v205_v31 = vpop.xlane.xlu0 %204 }
 0x1d9   :  { %v209_v32 = vsub.f32 %v200_v24, %v205_v31 }
 0x1db   :  { %v211_v33 = vmul.f32 1.442695, %v209_v32 }
 0x1dd   :  { %351 = vpow2.f32 %v211_v33 }
 0x1e0   :  { %v208_v34 = vpop.xlane.xlu0 %207 }
 0x1e1   :  { %v210_v35 = vsub.f32 %v201_v27, %v208_v34 }
 0x1e3   :  { %v352_v36 = vpop.eup %351  ;;  %v213_v37 = vmul.f32 1.442695, %v210_v35 }
 0x1e4   :  { %v215_v38 = vsel %vm202_vm3, %v352_v36, 0.0 }
 0x1e5   :  { %353 = vpow2.f32 %v213_v37  ;;  %216 = vadd.xlane.f32.xlu1 %v215_v38 }
 0x1eb   :  { %v354_v39 = vpop.eup %353 }
 0x1ec   :  { %v218_v40 = vsel %vm202_vm3, %v354_v39, 0.0 }
 0x1ed   :  { %219 = vadd.xlane.f32.xlu1 %v218_v40 }
 0x258   :  { %v217_v45 = vpop.xlane.xlu1 %216 }
 0x259   :  { %355 = vrcp.f32 %v217_v45 }
 0x25f   :  { %v356_v46 = vpop.eup %355 }
 0x260   :  { %v223_v47 = vmul.f32 %v356_v46, %v352_v36  ;;  %v220_v48 = vpop.xlane.xlu1 %219 }
 0x261   :  { %357 = vrcp.f32 %v220_v48 }
 0x262   :  { %v225_v49 = vpack.c.bf16 %v223_v47, %v223_v47 }
 0x264   :  { %326 = vmatmul.msk.bf16.vlgmr.msra.gmra.mxu3 %vm202_vm3, %v225_v49 }
 0x267   :  { %v358_v50 = vpop.eup %357 }
 0x268   :  { %v224_v51 = vmul.f32 %v358_v50, %v354_v39 }
 0x26a   :  { %v226_v52 = vpack.c.bf16 %v224_v51, %v224_v51 }
 0x274   :  { %327 = vmatmul.msk.bf16.vlgmr.msrb.gmra.mxu3 %vm202_vm3, %v226_v52 }
 0x2e7   :  { %v245_v53 = vpop.f32.mrf.mxu3 }
 0x2e8   :  { %268 = vst [vmem:[#allocation9] sm:$0xff] %v245_v53 }
 0x2ef   :  { %v247_v54 = vpop.f32.mrf.mxu3 }
 0x2f7   :  { %v264_v55 = vpop.f32.mrf.mxu3 }
 0x2f8   :  { %269 = vst [vmem:[#allocation9 + $0x8] sm:$0xff] %v264_v55 }
 0x2f9   :  { %282 = dma.vmem_to_hbm [thread:$0]  %s275_s7, 256, %s277_s10, [#allocation5], %s468_s11, %s468_s11, %s469_s12  }
 0x2ff   :  { %v266_v56 = vpop.f32.mrf.mxu3 }
 0x300   :  { %459 = dma.done.wait [#allocation5], 256  }
 0x301   :  { %460 = vsyncadd [#allocation5], 4294967040 }
 0x302   :  { %287 = vsyncpa [#allocation4], 1 }
 0x303   :  { %288 = vsyncpa [#allocation7], 1 }
 0x304   :  { %289 = vsyncpa [#allocation5], 1 }

</bundles_post_ra>
